<compile_context>
chip_gen: v7x
topology: tpu7x:2x2x1
jax: 0.10.0
libtpu: 0.0.40
codegen_flags: <defaults>
</compile_context>

<pallas_src>
import numpy as np
import jax
import jax.numpy as jnp
from jax.experimental import pallas as pl
from jax.experimental.pallas import tpu as pltpu

# Shapes implied by the module: Conv2d(1,8,3,stride=2) feeding Linear(73,48)
# => 8 * 3 * 3 = 72 conv features (+1 for c), so conv output is 3x3 and input is 8x8.
IN_C, OUT_C, K, STRIDE = 1, 8, 3, 2
H = W = 8
OH = OW = 3                  # (8 - 3) // 2 + 1
P = OH * OW                  # 9 output positions per sample
FLAT = OUT_C * P             # 72 flattened conv features
HID1 = 48                    # Linear(73, 48)
HID2 = 16                    # Linear(48, 16)
XC = H * W + 1               # 65 columns: 64 flat-image pixels + 1 conditioning value


def _round_up(a, b):
    return -(-a // b) * b


def encoder_kernel(xc_ref, wc_ref, bc_ref, w1a_ref, w1c_ref, b1_ref,
                   w2_ref, b2_ref, out_ref):
    # xc: (Nb, 65) f32 = [flat image (64) | c (1)]
    x = xc_ref[:, :H * W].astype(jnp.bfloat16)          # (Nb, 64) bf16 MXU operand
    c = xc_ref[:, H * W:]                               # (Nb, 1)  f32

    # Conv (as dense matmul, bf16 x bf16 -> f32 acc) + bias + ReLU -> (Nb, 72)
    feat = jnp.dot(x, wc_ref[...], preferred_element_type=jnp.float32)
    feat = jnp.maximum(feat + bc_ref[...], 0.0)

    # Linear(73, 48): conv-feature part on MXU, conditioning part as broadcast mul.
    h = jnp.dot(feat.astype(jnp.bfloat16), w1a_ref[...],
                preferred_element_type=jnp.float32)
    h = jnp.maximum(h + c * w1c_ref[...] + b1_ref[...], 0.0)              # (Nb, 48)

    # Linear(48, 16) + ReLU
    y = jnp.dot(h.astype(jnp.bfloat16), w2_ref[...],
                preferred_element_type=jnp.float32) + b2_ref[...]
    out_ref[...] = jnp.maximum(y, 0.0)                                    # (Nb, 16)


def _build_conv_matrix(conv_w, conv_b):
    """Dense (64, 72) matrix W s.t. x_flat @ W == conv2d(x) flattened channel-major."""
    rows, cols, co_l, kh_l, kw_l = [], [], [], [], []
    for co in range(OUT_C):
        for oh in range(OH):
            for ow in range(OW):
                f = co * P + oh * OW + ow                 # torch.flatten order
                for kh in range(K):
                    for kw in range(K):
                        rows.append((oh * STRIDE + kh) * W + (ow * STRIDE + kw))
                        cols.append(f)
                        co_l.append(co)
                        kh_l.append(kh)
                        kw_l.append(kw)
    vals = conv_w[np.asarray(co_l), 0, np.asarray(kh_l), np.asarray(kw_l)]
    wc = jnp.zeros((H * W, FLAT), dtype=jnp.float32)
    wc = wc.at[np.asarray(rows), np.asarray(cols)].set(vals.astype(jnp.float32))
    bc = jnp.repeat(conv_b.astype(jnp.float32), P).reshape(1, FLAT)
    return wc, bc


def cae_conv_large_encoder_cond1_forward(x, c, conv_w, conv_b, w1, b1, w2, b2,
                                         block_n=8192):
    """x: (N, 1, 8, 8) NCHW float32, c: (N, 1) float32. Returns (N, 16) float32."""
    n = x.shape[0]
    x_flat = x.reshape(n, H * W).astype(jnp.float32)      # contiguous view
    c_in = c.reshape(n, 1).astype(jnp.float32)
    x_aug = jnp.concatenate([x_flat, c_in], axis=1)       # (n, 65): fold c into x

    # Fold conv into a dense matmul; split Linear(73,48) into conv / conditioning parts.
    wc, bc = _build_conv_matrix(conv_w, conv_b)           # (64, 72), (1, 72)
    wc = wc.astype(jnp.bfloat16)                          # MXU operand
    w1a = w1[:, :FLAT].T.astype(jnp.bfloat16)             # (72, 48) MXU operand
    w1c = w1[:, FLAT:FLAT + 1].T.astype(jnp.float32)      # (1, 48)  VPU broadcast
    b1r = b1.reshape(1, HID1).astype(jnp.float32)
    w2t = w2.T.astype(jnp.bfloat16)                       # (48, 16) MXU operand
    b2r = b2.reshape(1, HID2).astype(jnp.float32)

    # Batch tile: multiple of 16 (bf16 sublane packing), clamped so the grid gets at
    # least 2 steps when the batch allows it (feeds both v7x TensorCores via the
    # "parallel" dimension semantics) and never exceeds block_n.
    half = _round_up(-(-n // 2), 16)
    nb = max(16, min(_round_up(block_n, 16), half))
    n_pad = _round_up(n, nb)
    if n_pad != n:
        x_aug = jnp.pad(x_aug, ((0, n_pad - n), (0, 0)))

    grid = (n_pad // nb,)
    out = pl.pallas_call(
        encoder_kernel,
        out_shape=jax.ShapeDtypeStruct((n_pad, HID2), jnp.float32),
        grid=grid,
        in_specs=[
            pl.BlockSpec((nb, XC), lambda i: (i, 0)),          # [x | c] block (pipelined)
            pl.BlockSpec((H * W, FLAT), lambda i: (0, 0)),     # conv matrix (resident, bf16)
            pl.BlockSpec((1, FLAT), lambda i: (0, 0)),         # conv bias (f32)
            pl.BlockSpec((FLAT, HID1), lambda i: (0, 0)),      # W1 conv part (bf16)
            pl.BlockSpec((1, HID1), lambda i: (0, 0)),         # W1 cond part (f32)
            pl.BlockSpec((1, HID1), lambda i: (0, 0)),         # b1
            pl.BlockSpec((HID1, HID2), lambda i: (0, 0)),      # W2 (bf16)
            pl.BlockSpec((1, HID2), lambda i: (0, 0)),         # b2
        ],
        out_specs=pl.BlockSpec((nb, HID2), lambda i: (i, 0)),
        compiler_params=pltpu.CompilerParams(
            dimension_semantics=("parallel",),                 # megacore sharding on v7x
            vmem_limit_bytes=48 * 1024 * 1024,                 # headroom vs v7x 64 MiB VMEM
        ),
    )(x_aug, wc, bc, w1a, w1c, b1r, w2t, b2r)
    return out[:n]


def reference_forward(x, c, conv_w, conv_b, w1, b1, w2, b2):
    """Pure-JAX f32 replica of the PyTorch forward for validation."""
    y = jax.lax.conv_general_dilated(
        x, conv_w, window_strides=(STRIDE, STRIDE), padding="VALID",
        dimension_numbers=("NCHW", "OIHW", "NCHW"),
    ) + conv_b.reshape(1, OUT_C, 1, 1)
    y = jnp.maximum(y, 0.0)
    y = y.reshape(x.shape[0], -1)                         # torch.flatten(start_dim=1)
    y = jnp.concatenate([y, c], axis=1)                   # torch.hstack((x, c))
    h = jnp.maximum(y @ w1.T + b1, 0.0)                   # Linear(73,48) + ReLU
    return jnp.maximum(h @ w2.T + b2, 0.0)                # Linear(48,16) + ReLU


def _check(out, ref, tol=2e-2):
    # bf16 MXU operands with f32 accumulation: ~1e-2 relative error budget.
    err = float(jnp.max(jnp.abs(out - ref)) / (jnp.max(jnp.abs(ref)) + 1e-6))
    assert err < tol, err


if __name__ == "__main__":
    key = jax.random.PRNGKey(0)
    ks = jax.random.split(key, 8)

    N = 2
    x = jax.random.normal(ks[0], (N, IN_C, H, W), dtype=jnp.float32)
    c = jax.random.normal(ks[1], (N, 1), dtype=jnp.float32)

    # Deterministic synthetic parameters (shapes from the nn.Module definition).
    conv_w = 0.2 * jax.random.normal(ks[2], (OUT_C, IN_C, K, K), dtype=jnp.float32)
    conv_b = 0.2 * jax.random.normal(ks[3], (OUT_C,), dtype=jnp.float32)
    w1 = 0.2 * jax.random.normal(ks[4], (HID1, FLAT + 1), dtype=jnp.float32)   # Linear(73,48)
    b1 = 0.2 * jax.random.normal(ks[5], (HID1,), dtype=jnp.float32)
    w2 = 0.2 * jax.random.normal(ks[6], (HID2, HID1), dtype=jnp.float32)       # Linear(48,16)
    b2 = 0.2 * jax.random.normal(ks[7], (HID2,), dtype=jnp.float32)

    out = cae_conv_large_encoder_cond1_forward(x, c, conv_w, conv_b, w1, b1, w2, b2)
    out = jax.block_until_ready(out)
    ref = reference_forward(x, c, conv_w, conv_b, w1, b1, w2, b2)
    assert out.shape == (N, HID2) and out.dtype == jnp.float32
    _check(out, ref)

    # Exercise the multi-step batch grid + last-partial-block padding path.
    N2 = 53
    x2 = jax.random.normal(ks[0], (N2, IN_C, H, W), dtype=jnp.float32)
    c2 = jax.random.normal(ks[1], (N2, 1), dtype=jnp.float32)
    out2 = jax.block_until_ready(
        cae_conv_large_encoder_cond1_forward(x2, c2, conv_w, conv_b, w1, b1, w2, b2,
                                             block_n=16))
    ref2 = reference_forward(x2, c2, conv_w, conv_b, w1, b1, w2, b2)
    _check(out2, ref2)

    print("KERNEL_OK")
</pallas_src>

<mosaic_0001>
module attributes {stable_mosaic.version = 11 : i64} {
  func.func @encoder_kernel(%arg0: i32, %arg1: memref<16x65xf32, #tpu.memory_space<vmem>>, %arg2: memref<64x72xbf16, #tpu.memory_space<vmem>>, %arg3: memref<1x72xf32, #tpu.memory_space<vmem>>, %arg4: memref<72x48xbf16, #tpu.memory_space<vmem>>, %arg5: memref<1x48xf32, #tpu.memory_space<vmem>>, %arg6: memref<1x48xf32, #tpu.memory_space<vmem>>, %arg7: memref<48x16xbf16, #tpu.memory_space<vmem>>, %arg8: memref<1x16xf32, #tpu.memory_space<vmem>>, %arg9: memref<16x16xf32, #tpu.memory_space<vmem>>) attributes {dimension_semantics = [#tpu.dimension_semantics<parallel>], iteration_bounds = array<i64: 1>, scalar_prefetch = 0 : i64, scratch_operands = 0 : i64, tpu.core_type = #tpu.core_type<tc>, window_params = [{transform_indices = @transform_0, window_bounds = array<i64: 16, 65>}, {pipeline_mode = #tpu.pipeline_mode<synchronous>, transform_indices = @transform_1, window_bounds = array<i64: 64, 72>}, {pipeline_mode = #tpu.pipeline_mode<synchronous>, transform_indices = @transform_2, window_bounds = array<i64: 1, 72>}, {pipeline_mode = #tpu.pipeline_mode<synchronous>, transform_indices = @transform_3, window_bounds = array<i64: 72, 48>}, {pipeline_mode = #tpu.pipeline_mode<synchronous>, transform_indices = @transform_4, window_bounds = array<i64: 1, 48>}, {pipeline_mode = #tpu.pipeline_mode<synchronous>, transform_indices = @transform_5, window_bounds = array<i64: 1, 48>}, {pipeline_mode = #tpu.pipeline_mode<synchronous>, transform_indices = @transform_6, window_bounds = array<i64: 48, 16>}, {pipeline_mode = #tpu.pipeline_mode<synchronous>, transform_indices = @transform_7, window_bounds = array<i64: 1, 16>}, {transform_indices = @transform_8, window_bounds = array<i64: 16, 16>}]} {
    %c0 = arith.constant 0 : index
    %c0_0 = arith.constant 0 : index
    %0 = vector.load %arg1[%c0, %c0_0] : memref<16x65xf32, #tpu.memory_space<vmem>>, vector<16x64xf32>
    %1 = arith.truncf %0 : vector<16x64xf32> to vector<16x64xbf16>
    %c0_1 = arith.constant 0 : index
    %c64 = arith.constant 64 : index
    %2 = vector.load %arg1[%c0_1, %c64] : memref<16x65xf32, #tpu.memory_space<vmem>>, vector<16x1xf32>
    %c0_2 = arith.constant 0 : index
    %c0_3 = arith.constant 0 : index
    %3 = vector.load %arg2[%c0_2, %c0_3] : memref<64x72xbf16, #tpu.memory_space<vmem>>, vector<64x72xbf16>
    %cst = arith.constant dense<0.000000e+00> : vector<16x72xf32>
    %4 = tpu.matmul %1, %3, %cst {dimension_numbers = #tpu.dot_dimension_numbers<[1], [0], [0], [1], [0, 0, 1, 1], [], []>} : vector<16x64xbf16>, vector<64x72xbf16>, vector<16x72xf32> -> vector<16x72xf32>
    %c0_4 = arith.constant 0 : index
    %c0_5 = arith.constant 0 : index
    %5 = vector.load %arg3[%c0_4, %c0_5] : memref<1x72xf32, #tpu.memory_space<vmem>>, vector<1x72xf32>
    %6 = vector.broadcast %5 : vector<1x72xf32> to vector<16x72xf32>
    %7 = arith.addf %4, %6 : vector<16x72xf32>
    %cst_6 = arith.constant 0.000000e+00 : f32
    %8 = vector.broadcast %cst_6 : f32 to vector<16x72xf32>
    %9 = arith.maximumf %7, %8 : vector<16x72xf32>
    %10 = arith.truncf %9 : vector<16x72xf32> to vector<16x72xbf16>
    %c0_7 = arith.constant 0 : index
    %c0_8 = arith.constant 0 : index
    %11 = vector.load %arg4[%c0_7, %c0_8] : memref<72x48xbf16, #tpu.memory_space<vmem>>, vector<72x48xbf16>
    %cst_9 = arith.constant dense<0.000000e+00> : vector<16x48xf32>
    %12 = tpu.matmul %10, %11, %cst_9 {dimension_numbers = #tpu.dot_dimension_numbers<[1], [0], [0], [1], [0, 0, 1, 1], [], []>} : vector<16x72xbf16>, vector<72x48xbf16>, vector<16x48xf32> -> vector<16x48xf32>
    %c0_10 = arith.constant 0 : index
    %c0_11 = arith.constant 0 : index
    %13 = vector.load %arg5[%c0_10, %c0_11] : memref<1x48xf32, #tpu.memory_space<vmem>>, vector<1x48xf32>
    %14 = vector.broadcast %2 : vector<16x1xf32> to vector<16x48xf32>
    %15 = vector.broadcast %13 : vector<1x48xf32> to vector<16x48xf32>
    %16 = arith.mulf %14, %15 : vector<16x48xf32>
    %17 = arith.addf %12, %16 : vector<16x48xf32>
    %c0_12 = arith.constant 0 : index
    %c0_13 = arith.constant 0 : index
    %18 = vector.load %arg6[%c0_12, %c0_13] : memref<1x48xf32, #tpu.memory_space<vmem>>, vector<1x48xf32>
    %19 = vector.broadcast %18 : vector<1x48xf32> to vector<16x48xf32>
    %20 = arith.addf %17, %19 : vector<16x48xf32>
    %cst_14 = arith.constant 0.000000e+00 : f32
    %21 = vector.broadcast %cst_14 : f32 to vector<16x48xf32>
    %22 = arith.maximumf %20, %21 : vector<16x48xf32>
    %23 = arith.truncf %22 : vector<16x48xf32> to vector<16x48xbf16>
    %c0_15 = arith.constant 0 : index
    %c0_16 = arith.constant 0 : index
    %24 = vector.load %arg7[%c0_15, %c0_16] : memref<48x16xbf16, #tpu.memory_space<vmem>>, vector<48x16xbf16>
    %cst_17 = arith.constant dense<0.000000e+00> : vector<16x16xf32>
    %25 = tpu.matmul %23, %24, %cst_17 {dimension_numbers = #tpu.dot_dimension_numbers<[1], [0], [0], [1], [0, 0, 1, 1], [], []>} : vector<16x48xbf16>, vector<48x16xbf16>, vector<16x16xf32> -> vector<16x16xf32>
    %c0_18 = arith.constant 0 : index
    %c0_19 = arith.constant 0 : index
    %26 = vector.load %arg8[%c0_18, %c0_19] : memref<1x16xf32, #tpu.memory_space<vmem>>, vector<1x16xf32>
    %27 = vector.broadcast %26 : vector<1x16xf32> to vector<16x16xf32>
    %28 = arith.addf %25, %27 : vector<16x16xf32>
    %cst_20 = arith.constant 0.000000e+00 : f32
    %29 = vector.broadcast %cst_20 : f32 to vector<16x16xf32>
    %30 = arith.maximumf %28, %29 : vector<16x16xf32>
    %c0_21 = arith.constant 0 : index
    %c0_22 = arith.constant 0 : index
    %31 = vector.load %arg9[%c0_21, %c0_22] : memref<16x16xf32, #tpu.memory_space<vmem>>, vector<16x16xf32>
    tpu.vector_store %arg9[%c0_21, %c0_22], %30 {strides = array<i32>} : memref<16x16xf32, #tpu.memory_space<vmem>>, vector<16x16xf32>,
    return
  }
  func.func @transform_0(%arg0: i32) -> (i32, i32) {
    %c0_i32 = arith.constant 0 : i32
    %c0_i32_0 = arith.constant 0 : i32
    return %arg0, %c0_i32 : i32, i32
  }
  func.func @transform_1(%arg0: i32) -> (i32, i32) {
    %c0_i32 = arith.constant 0 : i32
    %c0_i32_0 = arith.constant 0 : i32
    %c0_i32_1 = arith.constant 0 : i32
    return %c0_i32, %c0_i32_0 : i32, i32
  }
  func.func @transform_2(%arg0: i32) -> (i32, i32) {
    %c0_i32 = arith.constant 0 : i32
    %c0_i32_0 = arith.constant 0 : i32
    %c0_i32_1 = arith.constant 0 : i32
    return %c0_i32, %c0_i32_0 : i32, i32
  }
  func.func @transform_3(%arg0: i32) -> (i32, i32) {
    %c0_i32 = arith.constant 0 : i32
    %c0_i32_0 = arith.constant 0 : i32
    %c0_i32_1 = arith.constant 0 : i32
    return %c0_i32, %c0_i32_0 : i32, i32
  }
  func.func @transform_4(%arg0: i32) -> (i32, i32) {
    %c0_i32 = arith.constant 0 : i32
    %c0_i32_0 = arith.constant 0 : i32
    %c0_i32_1 = arith.constant 0 : i32
    return %c0_i32, %c0_i32_0 : i32, i32
  }
  func.func @transform_5(%arg0: i32) -> (i32, i32) {
    %c0_i32 = arith.constant 0 : i32
    %c0_i32_0 = arith.constant 0 : i32
    %c0_i32_1 = arith.constant 0 : i32
    return %c0_i32, %c0_i32_0 : i32, i32
  }
  func.func @transform_6(%arg0: i32) -> (i32, i32) {
    %c0_i32 = arith.constant 0 : i32
    %c0_i32_0 = arith.constant 0 : i32
    %c0_i32_1 = arith.constant 0 : i32
    return %c0_i32, %c0_i32_0 : i32, i32
  }
  func.func @transform_7(%arg0: i32) -> (i32, i32) {
    %c0_i32 = arith.constant 0 : i32
    %c0_i32_0 = arith.constant 0 : i32
    %c0_i32_1 = arith.constant 0 : i32
    return %c0_i32, %c0_i32_0 : i32, i32
  }
  func.func @transform_8(%arg0: i32) -> (i32, i32) {
    %c0_i32 = arith.constant 0 : i32
    %c0_i32_0 = arith.constant 0 : i32
    return %arg0, %c0_i32 : i32, i32
  }
}

</mosaic_0001>

<bundles_post_ra>
// kernel: tpu_custom_call.1
= control target key start
LH: loop header
LB: loop body
LE: loop exit
PB: predicated region body
PF: predicated region fallthrough
CT: control target
= control target key end

     0   :  { %v447_v1 = vmov 0.0   ;;  %vm448_vm0 = vmmov 0   ;;  %s567_s0 = inlined_call_operand.vmem [shape: f32[16,65], index: 0, kind: input, shape index: {}]   ;;  %s568_s1 = inlined_call_operand.vmem [shape: bf16[64,72], index: 1, kind: input, shape index: {}]   ;;  %s569_s2 = inlined_call_operand.vmem [shape: f32[1,72], index: 2, kind: input, shape index: {}]   ;;  %s570_s3 = inlined_call_operand.vmem [shape: bf16[72,48], index: 3, kind: input, shape index: {}]   ;;  %s571_s4 = inlined_call_operand.vmem [shape: f32[1,48], index: 4, kind: input, shape index: {}]   ;;  %s572_s5 = inlined_call_operand.vmem [shape: f32[1,48], index: 5, kind: input, shape index: {}]   ;;  %s573_s6 = inlined_call_operand.vmem [shape: bf16[48,16], index: 6, kind: input, shape index: {}]   ;;  %s574_s7 = inlined_call_operand.vmem [shape: f32[1,16], index: 7, kind: input, shape index: {}]   ;;  %s575_s8 = inlined_call_operand.hbm [shape: f32[16,16], index: 8, kind: output, shape index: {}]  }
   0x1   :  { %v411_v0 = vld [vmem:[%s568_s1] sm:$0xff]   ;;  %368 = vmatprep.subr.bf16.mxu0 %v447_v1  ;;  %380 = vmatprep.subr.bf16.mxu1 %v447_v1  ;;  %v412_v2 = vld [vmem:[%s568_s1 + $0x8] sm:$0xff]   ;;  %v413_v4 = vld [vmem:[%s568_s1 + $0x10] sm:$0xff]  }
   0x2   :  { %369 = vmatpush3.bf16.msra.mxu0 %v411_v0  ;;  %376 = vmatprep.mubr.msk.bf16.mxu0 %vm448_vm0, %v447_v1  ;;  %v415_v3 = vld [vmem:[%s570_s3] sm:$0xff]   ;;  %v416_v5 = vld [vmem:[%s570_s3 + $0x8] sm:$0xff]   ;;  %v414_v6 = vld [vmem:[%s568_s1 + $0x18] sm:$0xff]  }
   0x3   :  { %370 = vmatprep.subr.bf16.mxu0 %v447_v1  ;;  %390 = vmatprep.mubr.msk.bf16.mxu1 %vm448_vm0, %v447_v1  ;;  %v31_v7 = vld [vmem:[%s567_s0] sm:$0xff]  ;;  %v32_v8 = vld [vmem:[%s567_s0 + $0x8] sm:$0xff]  ;;  %v417_v9 = vld [vmem:[%s570_s3 + $0x10] sm:$0xff]  }
   0x4   :  { %381 = vmatpush3.bf16.msra.mxu1 %v415_v3 }
   0x5   :  { %382 = vmatprep.subr.bf16.mxu1 %v447_v1 }
   0x6   :  { %371 = vmatpush3.bf16.msra.mxu0 %v412_v2 }
   0x7   :  { %372 = vmatprep.subr.bf16.mxu0 %v447_v1 }
   0x8   :  { %383 = vmatpush3.bf16.msra.mxu1 %v416_v5 }
   0xa   :  { %373 = vmatpush3.bf16.msra.mxu0 %v413_v4 }
   0xb   :  { %374 = vmatprep.subr.bf16.mxu0 %v447_v1 }
   0xc   :  { %13 = vsyncpa [#allocation3], 0  ;;  %384 = vmatprep.subr.bf16.mxu1 %v447_v1  ;;  %v33_v10 = vpack.c.bf16 %v32_v8, %v31_v7  ;;  %vm73_vm1 = vcmask 523264   ;;  %v418_v11 = vld [vmem:[%s570_s3 + $0x18] sm:$0xff]   ;;  %v419_v12 = vld [vmem:[%s570_s3 + $0x20] ss:$0 sps:$4 sm:$0xff]  }
   0xd   :  { %385 = vmatpush3.bf16.msra.mxu1 %v417_v9  ;;  %vm180_vm2 = vcmask 1043456   ;;  %v449_v14 = vmov 64   ;;  %v334_v15 = vld [vmem:[%s569_s2] ss:$0 sm:$0xff]  ;;  %vm176_vm3 = vcmask 588800   ;;  %v421_v26 = vld [vmem:[%s573_s6 + $0x8] sm:$0xff]  }
   0xe   :  { %375 = vmatpush3.bf16.msra.mxu0 %v414_v6  ;;  %386 = vmatprep.subr.bf16.mxu1 %v447_v1  ;;  %v182_v13 = vsel %vm180_vm2, %v419_v12, 0  ;;  %v420_v25 = vld [vmem:[%s573_s6] sm:$0xff]   ;;  %v422_v27 = vld [vmem:[%s573_s6 + $0x10] sm:$0xff]   ;;  %vm268_vm4 = vcmask 392192   ;;  %vm315_vm5 = vcmask 130048  }
   0xf   :  { %394 = vmatprep.subr.bf16.mxu0 %v447_v1  ;;  %410 = vset.pattern.permute.xlu0 %v449_v14  ;;  %v340_v29 = vld [vmem:[%s571_s4] ss:$0 sm:$0xff] }
  0x10   :  { %133 = vperm.xlu0 %410, %v31_v7   ;;  %v347_v33 = vld [vmem:[%s572_s5] ss:$0 sm:$0xff]  ;;  %s450_s5 = smov [#allocation2]  }
  0x11   :  { %377 = vmatmul.mubr.msk.bf16.vlgmr.msra.gmra.mrb[0].mxu0 %vm73_vm1, %v33_v10  ;;  %387 = vmatpush3.bf16.msra.mxu1 %v418_v11  ;;  %v348_v45 = vld [vmem:[%s574_s7] ss:$0 sm:$0xff]  ;;  %s323_s13 = sshll.u32 %s450_s5, 4  ;;  %s324_s13 = int_to_ptr.vmem [resolvable:$true] %s323_s13 }
  0x12   :  { %400 = vmatprep.mubr.msk.bf16.mxu0 %vm448_vm0, %v447_v1  ;;  %388 = vmatprep.subr.bf16.mxu1 %v447_v1  ;;  %s423_s14 = scalar_lea.vmem %s324_s13, 256  ;;  %p428_p1 = scmp.lt.s32.totalorder %s324_s13, %s324_s13 }
  0x13   :  { %395 = vmatpush3.bf16.msra.mxu0 %v420_v25  ;;  %p424_p0 = scmp.ne.s32.totalorder %s324_s13, %s423_s14  ;;  %p429_p2 = scmp.lt.s32.totalorder %s423_s14, %s423_s14 }
  0x14   :  { %138 = vperm.xlu0 %410, %v32_v8   ;;  %396 = vmatprep.subr.bf16.mxu0 %v447_v1 }
  0x15   :  { %389 = vmatpush3.bf16.msra.mxu1 %v182_v13  ;;  %p430_p3 = por %p429_p2, %p428_p1 }
  0x17   :  { %397 = vmatpush3.bf16.msra.mxu0 %v421_v26  ;;  %p431_p4 = pnand %p430_p3, %p424_p0 }
  0x18   :  { %398 = vmatprep.subr.bf16.mxu0 %v447_v1 }
  0x1b   :  { %399 = vmatpush3.bf16.msra.mxu0 %v422_v27 }
  0x8f   :  { %v134_v28 = vpop.permute.xlu0 %133 }
  0x90   :  { %v147_v31 = vmul.f32 %v340_v29, %v134_v28 }
  0x93   :  { %v139_v30 = vpop.permute.xlu0 %138 }
  0x94   :  { %v148_v34 = vmul.f32 %v340_v29, %v139_v30 }
  0xe4   :  { %v111_v16 = vpop.f32.mrb[0].mxu0 }
  0xe5   :  { %v112_v17 = vadd.f32 %v334_v15, %v111_v16  ;;  %v378_v18 = vpop.f32.mrb[1].mxu0 }
  0xe6   :  { %v114_v19 = vpop.f32.mrb[2].mxu0 }
  0xe7   :  { %v115_v20 = vadd.f32 %v334_v15, %v114_v19  ;;  %v379_v21 = vpop.f32.mrb[3].mxu0  ;;  %v118_v22 = vmax.f32 %v112_v17, 0.0 }
  0xe9   :  { %v119_v23 = vmax.f32 %v115_v20, 0.0 }
  0xeb   :  { %v120_v24 = vpack.c.bf16 %v119_v23, %v118_v22 }
  0xed   :  { %391 = vmatmul.mubr.msk.bf16.vlgmr.msra.gmra.mrb[0].mxu1 %vm176_vm3, %v120_v24 }
 0x1c0   :  { %v218_v32 = vpop.f32.mrb[0].mxu1 }
 0x1c1   :  { %v219_v35 = vadd.f32 %v218_v32, %v147_v31  ;;  %v392_v36 = vpop.f32.mrb[1].mxu1 }
 0x1c2   :  { %v221_v37 = vpop.f32.mrb[2].mxu1 }
 0x1c3   :  { %v232_v38 = vadd.f32 %v347_v33, %v219_v35  ;;  %v222_v39 = vadd.f32 %v221_v37, %v148_v34  ;;  %v393_v40 = vpop.f32.mrb[3].mxu1 }
 0x1c5   :  { %v233_v41 = vadd.f32 %v347_v33, %v222_v39  ;;  %v234_v42 = vmax.f32 %v232_v38, 0.0 }
 0x1c7   :  { %v235_v43 = vmax.f32 %v233_v41, 0.0 }
 0x1c9   :  { %v236_v44 = vpack.c.bf16 %v235_v43, %v234_v42 }
 0x1cb   :  { %401 = vmatmul.mubr.msk.bf16.vlgmr.msra.gmra.mrb[4].mxu0 %vm268_vm4, %v236_v44 }
 0x29e   :  { %v306_v46 = vpop.f32.mrb[4].mxu0 }
 0x29f   :  { %v307_v47 = vadd.f32 %v348_v45, %v306_v46  ;;  %v402_v48 = vpop.f32.mrb[5].mxu0 }
 0x2a0   :  { %v309_v49 = vpop.f32.mrb[6].mxu0 }
 0x2a1   :  { %v313_v50 = vmax.f32 %v307_v47, 0.0  ;;  %v310_v51 = vadd.f32 %v348_v45, %v309_v49  ;;  %v403_v52 = vpop.f32.mrb[7].mxu0 }
 0x2a3   :  { %316 = vst.msk [vmem:[#allocation2] sm:$0xff] %vm315_vm5, %v313_v50  ;;  %v314_v53 = vmax.f32 %v310_v51, 0.0 }
 0x2a5   :  { %317 = vst.msk [vmem:[#allocation2 + $0x8] sm:$0xff] %vm315_vm5, %v314_v53 }
 0x2a6   :  { %434 = shalt.err (!%p431_p4)
}
 0x2a7   :  { %s435_s16 = scalar_lea.hbm %s575_s8, 256 }
 0x2a8   :  { %p436_p5 = scmp.ne.s32.totalorder %s575_s8, %s435_s16  ;;  %p439_p6 = scmp.lt.u32.totalorder %s435_s16, %s575_s8 }
 0x2aa   :  { %p441_p7 = pnand %p439_p6, %p436_p5 }
 0x2ac   :  { %444 = shalt.err (!%p441_p7)
}
 0x2ad   :  { %s451_s21 = smov 128   ;;  %s452_s22 = smov 8  }
 0x2ae   :  { %329 = dma.vmem_to_hbm [thread:$0]  %s324_s13, 256, %s575_s8, [#allocation3], %s451_s21, %s451_s21, %s452_s22  }
 0x2af   :  { %445 = dma.done.wait [#allocation3], 256  }
 0x2b0   :  { %446 = vsyncadd [#allocation3], 4294967040 }
 0x2b1   :  { %333 = vsyncpa [#allocation3], 1 }

</bundles_post_ra>
